<compile_context>
chip_gen: v6e
topology: v6e:2x2x1
jax: 0.10.0
libtpu: 0.0.40
codegen_flags: <defaults>
</compile_context>

<pallas_src>
import jax
import jax.numpy as jnp
from jax.experimental import pallas as pl
from jax.experimental.pallas import tpu as pltpu


def _round_up(x, m):
    return (x + m - 1) // m * m


# --------------------------------------------------------------------------- #
# Kernel: one tile of the batch, both twins fused via block-diagonal weights.
# --------------------------------------------------------------------------- #
def critic_twin_kernel(state_ref, action_ref,
                       w1s_ref, w1a_ref, b1_ref,
                       w2_ref, b2_ref,
                       w3_ref, b3_ref,
                       out_ref):
    # Cast activations to the weight compute dtype *inside* the kernel (no-op
    # for f32 weights, bf16 cast fused with the load path for bf16 weights).
    s = state_ref[...].astype(w1s_ref.dtype)
    a = action_ref[...].astype(w1a_ref.dtype)

    # Layer 1: split matmul replaces concat([state, action]) @ W1; both twins
    # live side-by-side on the lane axis (2H wide).  f32 accumulate + bias.
    h1 = (jnp.dot(s, w1s_ref[...], preferred_element_type=jnp.float32)
          + jnp.dot(a, w1a_ref[...], preferred_element_type=jnp.float32)
          + b1_ref[...])
    h1 = jnp.maximum(h1, 0.0).astype(w2_ref.dtype)        # ReLU in f32

    # Layer 2: block-diagonal (2H, 2H2) keeps the twins independent.
    h2 = jnp.dot(h1, w2_ref[...], preferred_element_type=jnp.float32) + b2_ref[...]
    h2 = jnp.maximum(h2, 0.0).astype(w3_ref.dtype)

    # Output layer: block-diagonal (2H2, 2) -> (tb, 2) = [q1, q2]; no concat.
    out_ref[...] = (jnp.dot(h2, w3_ref[...], preferred_element_type=jnp.float32)
                    + b3_ref[...]).astype(out_ref.dtype)


# --------------------------------------------------------------------------- #
# One-time parameter fusion (do this at init / outside the hot loop).
# --------------------------------------------------------------------------- #
def fuse_params(params, compute_dtype=jnp.float32):
    """Fuse the two twins' weights lane-wise / block-diagonally and (optionally)
    cast matmul weights to `compute_dtype`.  Biases stay f32."""
    (w1s1, w1a1, b11, w21, b21, w31, b31,
     w1s2, w1a2, b12, w22, b22, w32, b32) = params
    H, H2 = w21.shape

    cw = lambda w: w.astype(compute_dtype)
    zf = jnp.zeros((H, H2), jnp.float32)
    z3 = jnp.zeros((H2, 1), jnp.float32)

    w1s = jnp.concatenate([w1s1, w1s2], axis=1)            # (Sd, 2H)
    w1a = jnp.concatenate([w1a1, w1a2], axis=1)            # (Ad, 2H)
    b1 = jnp.concatenate([b11, b12], axis=1)               # (1, 2H)  f32
    w2 = jnp.block([[w21, zf], [zf, w22]])                 # (2H, 2H2) block-diag
    b2 = jnp.concatenate([b21, b22], axis=1)                # (1, 2H2) f32
    w3 = jnp.block([[w31, z3], [z3, w32]])                 # (2H2, 2) block-diag
    b3 = jnp.concatenate([b31, b32], axis=1)                # (1, 2)   f32

    return (cw(w1s), cw(w1a), b1, cw(w2), b2, cw(w3), b3)


# --------------------------------------------------------------------------- #
# Wrapper
# --------------------------------------------------------------------------- #
def critic_twin_q1_q2(state, action, fused_params, *, block_batch=2048):
    """Returns (q1, q2), each (B, 1) float32, from one fused pallas_call.
    `fused_params` comes from fuse_params()."""
    w1s, w1a, b1, w2, b2, w3, b3 = fused_params

    B, Sd = state.shape
    _, Ad = action.shape
    H2_2 = w2.shape[1]
    H_2 = w1s.shape[1]

    # --- batch tiling -------------------------------------------------------
    # Big tiles amortize the ~0.35-0.6 us per-grid-step overhead; rebalance so
    # padding is small; keep >=2 tiles for large batches so v7x's two
    # TensorCores (dimension_semantics="parallel") both get work.
    sub = 8                                  # f32 sublane multiple
    Bp_min = _round_up(max(B, sub), sub)
    ntiles = pl.cdiv(Bp_min, block_batch)
    if ntiles == 1 and Bp_min >= 2048:       # split a large single tile (v7x megacore)
        ntiles = 2
    tb = _round_up(pl.cdiv(Bp_min, ntiles), sub)
    Bp = ntiles * tb

    st = state
    ac = action
    if Bp != B:
        st = jnp.pad(st, ((0, Bp - B), (0, 0)))
        ac = jnp.pad(ac, ((0, Bp - B), (0, 0)))

    weights = [w1s, w1a, b1, w2, b2, w3, b3]

    act_spec = lambda d: pl.BlockSpec((tb, d), lambda i: (i, 0))
    # Weights/biases: full-array blocks, constant index_map -> VMEM resident.
    resident = lambda arr: pl.BlockSpec(arr.shape, lambda i, _nd=arr.ndim: (0,) * _nd)

    flops = 2 * Bp * ((Sd + Ad) * H_2 + H_2 * H2_2 + H2_2 * 2)
    bytes_accessed = (Bp * (Sd + Ad) * 4
                      + sum(int(w.size) * w.dtype.itemsize for w in weights)
                      + Bp * 2 * 4)

    q12 = pl.pallas_call(
        critic_twin_kernel,
        out_shape=jax.ShapeDtypeStruct((Bp, 2), jnp.float32),
        grid=(ntiles,),
        in_specs=[act_spec(Sd), act_spec(Ad)] + [resident(w) for w in weights],
        out_specs=pl.BlockSpec((tb, 2), lambda i: (i, 0)),
        compiler_params=pltpu.CompilerParams(
            dimension_semantics=("parallel",),         # megacore on v7x
            vmem_limit_bytes=32 * 1024 * 1024,         # <= 64 MiB v7x physical
        ),
        cost_estimate=pl.CostEstimate(
            flops=int(flops), transcendentals=0, bytes_accessed=int(bytes_accessed)),
    )(st, ac, *weights)

    # TODO(synk): a fully "batch-on-lanes" (transposed) formulation would make
    # the final store lane-dense; skipped since the (tb, 2) store is a small,
    # per-tile fixed cost once tiles are 2K+ rows.
    q12 = q12[:B]                                       # drop padded garbage rows
    return q12[:, 0:1], q12[:, 1:2]


def critic_twin_forward(state, action, fused_params, **kw):
    """Matches CriticTwin.forward: (q1 + q2) / 2, shape (B, 1)."""
    q1, q2 = critic_twin_q1_q2(state, action, fused_params, **kw)
    return 0.5 * (q1 + q2)


def critic_twin_q_min(state, action, fused_params, **kw):
    """Matches CriticTwin.get_q_min: elementwise min(q1, q2)."""
    q1, q2 = critic_twin_q1_q2(state, action, fused_params, **kw)
    return jnp.minimum(q1, q2)


# --------------------------------------------------------------------------- #
# Parameter init (mirrors nn.Linear defaults + custom out-layer init)
# --------------------------------------------------------------------------- #
def init_params(key, state_dim, action_dim, hidden_size, hidden_size2, init_w=0.003):
    """Per-twin weights stored as (in, out); layer-1 weight split into
    state/action parts.  Biases stored as (1, out) f32."""
    def uniform(k, shape, bound):
        return jax.random.uniform(k, shape, jnp.float32, -bound, bound)

    in1 = state_dim + action_dim
    bound1 = 1.0 / float(in1) ** 0.5
    bound2 = 1.0 / float(hidden_size) ** 0.5

    def one_twin(k):
        ks = jax.random.split(k, 7)
        w1s = uniform(ks[0], (state_dim, hidden_size), bound1)
        w1a = uniform(ks[1], (action_dim, hidden_size), bound1)
        b1 = uniform(ks[2], (1, hidden_size), bound1)
        w2 = uniform(ks[3], (hidden_size, hidden_size2), bound2)
        b2 = uniform(ks[4], (1, hidden_size2), bound2)
        w3 = uniform(ks[5], (hidden_size2, 1), init_w)
        b3 = uniform(ks[6], (1, 1), init_w)
        return (w1s, w1a, b1, w2, b2, w3, b3)

    k1, k2 = jax.random.split(key)
    return one_twin(k1) + one_twin(k2)


# --------------------------------------------------------------------------- #
# Pure-JAX reference (unfused, concat-based, like the PyTorch module)
# --------------------------------------------------------------------------- #
def reference_forward(state, action, params):
    (w1s1, w1a1, b11, w21, b21, w31, b31,
     w1s2, w1a2, b12, w22, b22, w32, b32) = params
    x = jnp.concatenate([state, action], axis=1)

    def head(w1s, w1a, b1, w2, b2, w3, b3):
        w1 = jnp.concatenate([w1s, w1a], axis=0)
        h = jnp.maximum(x @ w1 + b1, 0.0)
        h = jnp.maximum(h @ w2 + b2, 0.0)
        return h @ w3 + b3

    q1 = head(w1s1, w1a1, b11, w21, b21, w31, b31)
    q2 = head(w1s2, w1a2, b12, w22, b22, w32, b32)
    return 0.5 * (q1 + q2), (q1, q2)


# --------------------------------------------------------------------------- #
if __name__ == "__main__":
    state_dim = 16
    action_dim = 16
    hidden_size = 32
    hidden_size2 = 48

    key = jax.random.PRNGKey(0)
    kp, ks, ka = jax.random.split(key, 3)
    params = init_params(kp, state_dim, action_dim, hidden_size, hidden_size2)

    # Fuse / cast weights ONCE (outside the per-call path).
    fused_f32 = fuse_params(params, jnp.float32)
    fused_bf16 = fuse_params(params, jnp.bfloat16)

    # --- small batch, single tile, f32 -------------------------------------
    batch = 8
    state = jax.random.normal(ks, (batch, state_dim), jnp.float32)
    action = jax.random.normal(ka, (batch, action_dim), jnp.float32)

    q = jax.block_until_ready(critic_twin_forward(state, action, fused_f32))
    q_ref, (q1_ref, q2_ref) = reference_forward(state, action, params)
    assert q.shape == (batch, 1)
    assert jnp.allclose(q, q_ref, atol=1e-5, rtol=1e-5), "f32 mismatch vs reference"

    q1, q2 = critic_twin_q1_q2(state, action, fused_f32)
    assert jnp.allclose(q1, q1_ref, atol=1e-5, rtol=1e-5)
    assert jnp.allclose(q2, q2_ref, atol=1e-5, rtol=1e-5)

    qmin = critic_twin_q_min(state, action, fused_f32)
    assert jnp.allclose(qmin, jnp.minimum(q1_ref, q2_ref), atol=1e-5, rtol=1e-5)

    # --- medium batch (sublane padding only, single tile), f32 -------------
    kb1, kb2 = jax.random.split(jax.random.PRNGKey(1))
    b_mid = 300
    state_m = jax.random.normal(kb1, (b_mid, state_dim), jnp.float32)
    action_m = jax.random.normal(kb2, (b_mid, action_dim), jnp.float32)
    q_mid = jax.block_until_ready(critic_twin_forward(state_m, action_m, fused_f32))
    q_mid_ref, _ = reference_forward(state_m, action_m, params)
    assert q_mid.shape == (b_mid, 1)
    assert jnp.allclose(q_mid, q_mid_ref, atol=1e-4, rtol=1e-4), "mid f32 mismatch"

    # --- larger batch (exercises the rebalanced 2-tile grid), f32 ----------
    kb3, kb4 = jax.random.split(jax.random.PRNGKey(2))
    b_big = 2100   # > block_batch=2048 -> ntiles=2, tb=1056, Bp=2112
    state_b = jax.random.normal(kb3, (b_big, state_dim), jnp.float32)
    action_b = jax.random.normal(kb4, (b_big, action_dim), jnp.float32)
    q_big = jax.block_until_ready(critic_twin_forward(state_b, action_b, fused_f32))
    q_big_ref, _ = reference_forward(state_b, action_b, params)
    assert q_big.shape == (b_big, 1)
    assert jnp.allclose(q_big, q_big_ref, atol=1e-4, rtol=1e-4), "tiled f32 mismatch"

    # --- bf16 weights, f32 activations at the boundary (in-kernel cast) ----
    q_bf16 = jax.block_until_ready(critic_twin_forward(state_b, action_b, fused_bf16))
    assert q_bf16.shape == (b_big, 1)
    assert jnp.allclose(q_bf16, q_big_ref, atol=5e-3, rtol=5e-2), "bf16 mismatch"

    print("KERNEL_OK")
</pallas_src>

<mosaic_0001>
module attributes {stable_mosaic.version = 11 : i64} {
  func.func @critic_twin_kernel(%arg0: i32, %arg1: memref<8x16xf32, #tpu.memory_space<vmem>>, %arg2: memref<8x16xf32, #tpu.memory_space<vmem>>, %arg3: memref<16x64xf32, #tpu.memory_space<vmem>>, %arg4: memref<16x64xf32, #tpu.memory_space<vmem>>, %arg5: memref<1x64xf32, #tpu.memory_space<vmem>>, %arg6: memref<64x96xf32, #tpu.memory_space<vmem>>, %arg7: memref<1x96xf32, #tpu.memory_space<vmem>>, %arg8: memref<96x2xf32, #tpu.memory_space<vmem>>, %arg9: memref<1x2xf32, #tpu.memory_space<vmem>>, %arg10: memref<8x2xf32, #tpu.memory_space<vmem>>) attributes {dimension_semantics = [#tpu.dimension_semantics<parallel>], iteration_bounds = array<i64: 1>, scalar_prefetch = 0 : i64, scratch_operands = 0 : i64, tpu.core_type = #tpu.core_type<tc>, window_params = [{transform_indices = @transform_0, window_bounds = array<i64: 8, 16>}, {transform_indices = @transform_1, window_bounds = array<i64: 8, 16>}, {pipeline_mode = #tpu.pipeline_mode<synchronous>, transform_indices = @transform_2, window_bounds = array<i64: 16, 64>}, {pipeline_mode = #tpu.pipeline_mode<synchronous>, transform_indices = @transform_3, window_bounds = array<i64: 16, 64>}, {pipeline_mode = #tpu.pipeline_mode<synchronous>, transform_indices = @transform_4, window_bounds = array<i64: 1, 64>}, {pipeline_mode = #tpu.pipeline_mode<synchronous>, transform_indices = @transform_5, window_bounds = array<i64: 64, 96>}, {pipeline_mode = #tpu.pipeline_mode<synchronous>, transform_indices = @transform_6, window_bounds = array<i64: 1, 96>}, {pipeline_mode = #tpu.pipeline_mode<synchronous>, transform_indices = @transform_7, window_bounds = array<i64: 96, 2>}, {pipeline_mode = #tpu.pipeline_mode<synchronous>, transform_indices = @transform_8, window_bounds = array<i64: 1, 2>}, {transform_indices = @transform_9, window_bounds = array<i64: 8, 2>}]} {
    %c0 = arith.constant 0 : index
    %c0_0 = arith.constant 0 : index
    %0 = vector.load %arg1[%c0, %c0_0] : memref<8x16xf32, #tpu.memory_space<vmem>>, vector<8x16xf32>
    %c0_1 = arith.constant 0 : index
    %c0_2 = arith.constant 0 : index
    %1 = vector.load %arg2[%c0_1, %c0_2] : memref<8x16xf32, #tpu.memory_space<vmem>>, vector<8x16xf32>
    %c0_3 = arith.constant 0 : index
    %c0_4 = arith.constant 0 : index
    %2 = vector.load %arg3[%c0_3, %c0_4] : memref<16x64xf32, #tpu.memory_space<vmem>>, vector<16x64xf32>
    %cst = arith.constant dense<0.000000e+00> : vector<8x64xf32>
    %3 = tpu.matmul %0, %2, %cst {dimension_numbers = #tpu.dot_dimension_numbers<[1], [0], [0], [1], [0, 0, 1, 1], [], []>} : vector<8x16xf32>, vector<16x64xf32>, vector<8x64xf32> -> vector<8x64xf32>
    %c0_5 = arith.constant 0 : index
    %c0_6 = arith.constant 0 : index
    %4 = vector.load %arg4[%c0_5, %c0_6] : memref<16x64xf32, #tpu.memory_space<vmem>>, vector<16x64xf32>
    %cst_7 = arith.constant dense<0.000000e+00> : vector<8x64xf32>
    %5 = tpu.matmul %1, %4, %cst_7 {dimension_numbers = #tpu.dot_dimension_numbers<[1], [0], [0], [1], [0, 0, 1, 1], [], []>} : vector<8x16xf32>, vector<16x64xf32>, vector<8x64xf32> -> vector<8x64xf32>
    %6 = arith.addf %3, %5 : vector<8x64xf32>
    %c0_8 = arith.constant 0 : index
    %c0_9 = arith.constant 0 : index
    %7 = vector.load %arg5[%c0_8, %c0_9] : memref<1x64xf32, #tpu.memory_space<vmem>>, vector<1x64xf32>
    %8 = vector.broadcast %7 : vector<1x64xf32> to vector<8x64xf32>
    %9 = arith.addf %6, %8 : vector<8x64xf32>
    %cst_10 = arith.constant 0.000000e+00 : f32
    %10 = vector.broadcast %cst_10 : f32 to vector<8x64xf32>
    %11 = arith.maximumf %9, %10 : vector<8x64xf32>
    %c0_11 = arith.constant 0 : index
    %c0_12 = arith.constant 0 : index
    %12 = vector.load %arg6[%c0_11, %c0_12] : memref<64x96xf32, #tpu.memory_space<vmem>>, vector<64x96xf32>
    %cst_13 = arith.constant dense<0.000000e+00> : vector<8x96xf32>
    %13 = tpu.matmul %11, %12, %cst_13 {dimension_numbers = #tpu.dot_dimension_numbers<[1], [0], [0], [1], [0, 0, 1, 1], [], []>} : vector<8x64xf32>, vector<64x96xf32>, vector<8x96xf32> -> vector<8x96xf32>
    %c0_14 = arith.constant 0 : index
    %c0_15 = arith.constant 0 : index
    %14 = vector.load %arg7[%c0_14, %c0_15] : memref<1x96xf32, #tpu.memory_space<vmem>>, vector<1x96xf32>
    %15 = vector.broadcast %14 : vector<1x96xf32> to vector<8x96xf32>
    %16 = arith.addf %13, %15 : vector<8x96xf32>
    %cst_16 = arith.constant 0.000000e+00 : f32
    %17 = vector.broadcast %cst_16 : f32 to vector<8x96xf32>
    %18 = arith.maximumf %16, %17 : vector<8x96xf32>
    %c0_17 = arith.constant 0 : index
    %c0_18 = arith.constant 0 : index
    %19 = vector.load %arg8[%c0_17, %c0_18] : memref<96x2xf32, #tpu.memory_space<vmem>>, vector<96x2xf32>
    %cst_19 = arith.constant dense<0.000000e+00> : vector<8x2xf32>
    %20 = tpu.matmul %18, %19, %cst_19 {dimension_numbers = #tpu.dot_dimension_numbers<[1], [0], [0], [1], [0, 0, 1, 1], [], []>} : vector<8x96xf32>, vector<96x2xf32>, vector<8x2xf32> -> vector<8x2xf32>
    %c0_20 = arith.constant 0 : index
    %c0_21 = arith.constant 0 : index
    %21 = vector.load %arg9[%c0_20, %c0_21] : memref<1x2xf32, #tpu.memory_space<vmem>>, vector<1x2xf32>
    %22 = vector.broadcast %21 : vector<1x2xf32> to vector<8x2xf32>
    %23 = arith.addf %20, %22 : vector<8x2xf32>
    %c0_22 = arith.constant 0 : index
    %c0_23 = arith.constant 0 : index
    %24 = vector.load %arg10[%c0_22, %c0_23] : memref<8x2xf32, #tpu.memory_space<vmem>>, vector<8x2xf32>
    tpu.vector_store %arg10[%c0_22, %c0_23], %23 {strides = array<i32>} : memref<8x2xf32, #tpu.memory_space<vmem>>, vector<8x2xf32>,
    return
  }
  func.func @transform_0(%arg0: i32) -> (i32, i32) {
    %c0_i32 = arith.constant 0 : i32
    %c0_i32_0 = arith.constant 0 : i32
    return %arg0, %c0_i32 : i32, i32
  }
  func.func @transform_1(%arg0: i32) -> (i32, i32) {
    %c0_i32 = arith.constant 0 : i32
    %c0_i32_0 = arith.constant 0 : i32
    return %arg0, %c0_i32 : i32, i32
  }
  func.func @transform_2(%arg0: i32) -> (i32, i32) {
    %c0_i32 = arith.constant 0 : i32
    %c0_i32_0 = arith.constant 0 : i32
    %c0_i32_1 = arith.constant 0 : i32
    return %c0_i32, %c0_i32_0 : i32, i32
  }
  func.func @transform_3(%arg0: i32) -> (i32, i32) {
    %c0_i32 = arith.constant 0 : i32
    %c0_i32_0 = arith.constant 0 : i32
    %c0_i32_1 = arith.constant 0 : i32
    return %c0_i32, %c0_i32_0 : i32, i32
  }
  func.func @transform_4(%arg0: i32) -> (i32, i32) {
    %c0_i32 = arith.constant 0 : i32
    %c0_i32_0 = arith.constant 0 : i32
    %c0_i32_1 = arith.constant 0 : i32
    return %c0_i32, %c0_i32_0 : i32, i32
  }
  func.func @transform_5(%arg0: i32) -> (i32, i32) {
    %c0_i32 = arith.constant 0 : i32
    %c0_i32_0 = arith.constant 0 : i32
    %c0_i32_1 = arith.constant 0 : i32
    return %c0_i32, %c0_i32_0 : i32, i32
  }
  func.func @transform_6(%arg0: i32) -> (i32, i32) {
    %c0_i32 = arith.constant 0 : i32
    %c0_i32_0 = arith.constant 0 : i32
    %c0_i32_1 = arith.constant 0 : i32
    return %c0_i32, %c0_i32_0 : i32, i32
  }
  func.func @transform_7(%arg0: i32) -> (i32, i32) {
    %c0_i32 = arith.constant 0 : i32
    %c0_i32_0 = arith.constant 0 : i32
    %c0_i32_1 = arith.constant 0 : i32
    return %c0_i32, %c0_i32_0 : i32, i32
  }
  func.func @transform_8(%arg0: i32) -> (i32, i32) {
    %c0_i32 = arith.constant 0 : i32
    %c0_i32_0 = arith.constant 0 : i32
    %c0_i32_1 = arith.constant 0 : i32
    return %c0_i32, %c0_i32_0 : i32, i32
  }
  func.func @transform_9(%arg0: i32) -> (i32, i32) {
    %c0_i32 = arith.constant 0 : i32
    %c0_i32_0 = arith.constant 0 : i32
    return %arg0, %c0_i32 : i32, i32
  }
}

</mosaic_0001>

<bundles_post_ra>
// kernel: tpu_custom_call.1
= control target key start
LH: loop header
LB: loop body
LE: loop exit
PB: predicated region body
PF: predicated region fallthrough
CT: control target
= control target key end

     0   :  { %14 = vsyncpa [#allocation3], 0  ;;  %s516_s30 = smov [#allocation2]   ;;  %s691_s0 = inlined_call_operand.vmem [shape: f32[8,16], index: 0, kind: input, shape index: {}]   ;;  %s692_s1 = inlined_call_operand.hbm [shape: f32[8,16], index: 1, kind: input, shape index: {}]   ;;  %s693_s2 = inlined_call_operand.vmem [shape: f32[16,64], index: 2, kind: input, shape index: {}]   ;;  %s694_s3 = inlined_call_operand.vmem [shape: f32[16,64], index: 3, kind: input, shape index: {}]   ;;  %s695_s4 = inlined_call_operand.vmem [shape: f32[1,64], index: 4, kind: input, shape index: {}]   ;;  %s696_s5 = inlined_call_operand.vmem [shape: f32[64,96], index: 5, kind: input, shape index: {}]   ;;  %s697_s6 = inlined_call_operand.vmem [shape: f32[1,96], index: 6, kind: input, shape index: {}]   ;;  %s698_s7 = inlined_call_operand.vmem [shape: f32[96,2], index: 7, kind: input, shape index: {}]   ;;  %s699_s8 = inlined_call_operand.vmem [shape: f32[1,2], index: 8, kind: input, shape index: {}]   ;;  %s700_s9 = inlined_call_operand.vmem [shape: f32[8,2], index: 9, kind: output, shape index: {}]  }
   0x1   :  { %s23_s10 = sshll.u32 %s516_s30, 4  ;;  %s24_s10 = int_to_ptr.vmem [resolvable:$true] %s23_s10 }
   0x2   :  { %s502_s11 = scalar_lea.vmem %s24_s10, 128  ;;  %p507_p1 = scmp.lt.s32.totalorder %s24_s10, %s24_s10 }
   0x3   :  { %p503_p0 = scmp.ne.s32.totalorder %s24_s10, %s502_s11  ;;  %p508_p2 = scmp.lt.s32.totalorder %s502_s11, %s502_s11 }
   0x5   :  { %p509_p3 = por %p508_p2, %p507_p1 }
   0x7   :  { %p510_p4 = pnand %p509_p3, %p503_p0 }
   0x9   :  { %513 = shalt.err (!%p510_p4)
}
   0xa   :  { %26 = dma.hbm_to_vmem [thread:$0]  %s692_s1, 128, %s24_s10, [#allocation3]  }
   0xb   :  { %514 = dma.done.wait [#allocation3], 128  }
   0xc   :  { %515 = vsyncadd [#allocation3], 4294967168  ;;  %v517_v0 = vmov 0.0   ;;  %vm518_vm0 = vmmov 0   ;;  %v49_v1 = vld [vmem:[%s694_s3 + $0x8] sm:$0xff]  ;;  %v48_v2 = vld [vmem:[%s694_s3] sm:$0xff] }
   0xd   :  { %431 = vmatprep.subr.mxu0 %v517_v0  ;;  %435 = vmatprep.mubr.msk.f32.mxu0 %vm518_vm0, %v517_v0  ;;  %v45_v3 = vld [vmem:[#allocation2] sm:$0xff]  ;;  %vm50_vm1 = vcmask 130048   ;;  %v47_v4 = vld [vmem:[%s693_s2 + $0x8] sm:$0xff]  ;;  %v213_v7 = vld [vmem:[%s696_s5 + $0x38] sm:$0xff]  ;;  %vm221_vm2 = vcmask 523264   ;;  %vm315_vm3 = vcmask 785408  }
   0xe   :  { %464 = vmatprep.subr.mxu1 %v517_v0  ;;  %488 = vmatprep.mubr.msk.f32.mxu1 %vm518_vm0, %v517_v0  ;;  %v46_v5 = vld [vmem:[%s693_s2] sm:$0xff]  ;;  %v212_v8 = vld [vmem:[%s696_s5 + $0x30] sm:$0xff]  ;;  %v211_v9 = vld [vmem:[%s696_s5 + $0x28] sm:$0xff]  ;;  %vm389_vm4 = vcmask 15360  }
   0xf   :  { %432 = vmatpush3.msra.mxu0 %v49_v1  ;;  %v44_v6 = vld [vmem:[%s691_s0] sm:$0xff]  ;;  %v209_v11 = vld [vmem:[%s696_s5 + $0x18] sm:$0xff]  ;;  %v208_v12 = vld [vmem:[%s696_s5 + $0x10] sm:$0xff] }
  0x10   :  { %433 = vmatprep.subr.mxu0 %v517_v0  ;;  %v210_v10 = vld [vmem:[%s696_s5 + $0x20] sm:$0xff]  ;;  %v207_v13 = vld [vmem:[%s696_s5 + $0x8] sm:$0xff]  ;;  %v307_v15 = vld [vmem:[%s698_s7 + $0x58] sm:$0xff] }
  0x11   :  { %434 = vmatpush3.msra.mxu0 %v48_v2  ;;  %v206_v14 = vld [vmem:[%s696_s5] sm:$0xff]  ;;  %v306_v16 = vld [vmem:[%s698_s7 + $0x50] sm:$0xff]  ;;  %465 = vmatpush3.msra.mxu1 %v307_v15  ;;  %v305_v17 = vld [vmem:[%s698_s7 + $0x48] sm:$0xff] }
  0x12   :  { %436 = vmatmul.mubr.msk.f32.vlgmr.msra.gmra.mxu0 %vm50_vm1, %v45_v3  ;;  %438 = vmatprep.subr.mxu0 %v517_v0  ;;  %v304_v18 = vld [vmem:[%s698_s7 + $0x40] sm:$0xff]  ;;  %v303_v19 = vld [vmem:[%s698_s7 + $0x38] sm:$0xff]  ;;  %v302_v20 = vld [vmem:[%s698_s7 + $0x30] sm:$0xff] }
  0x13   :  { %439 = vmatpush3.msra.mxu0 %v47_v4  ;;  %442 = vmatprep.mubr.msk.f32.mxu0 %vm518_vm0, %v517_v0  ;;  %v301_v21 = vld [vmem:[%s698_s7 + $0x28] sm:$0xff]  ;;  %v300_v22 = vld [vmem:[%s698_s7 + $0x20] sm:$0xff]  ;;  %v299_v23 = vld [vmem:[%s698_s7 + $0x18] sm:$0xff] }
  0x14   :  { %440 = vmatprep.subr.mxu0 %v517_v0  ;;  %466 = vmatprep.subr.mxu1 %v517_v0  ;;  %v398_v27 = vld [vmem:[%s695_s4] ss:$0 sm:$0xff]  ;;  %v298_v32 = vld [vmem:[%s698_s7 + $0x10] sm:$0xff]  ;;  %v297_v33 = vld [vmem:[%s698_s7 + $0x8] sm:$0xff] }
  0x15   :  { %441 = vmatpush3.msra.mxu0 %v46_v5  ;;  %467 = vmatpush3.msra.mxu1 %v306_v16  ;;  %v296_v34 = vld [vmem:[%s698_s7] sm:$0xff] }
  0x16   :  { %443 = vmatmul.mubr.msk.f32.vlgmr.msra.gmra.mxu0 %vm50_vm1, %v44_v6  ;;  %445 = vmatprep.subr.mxu0 %v517_v0  ;;  %v399_v35 = vld [vmem:[%s697_s6] ss:$0 sm:$0xff] }
  0x17   :  { %446 = vmatpush3.msra.mxu0 %v213_v7  ;;  %461 = vmatprep.mubr.msk.f32.mxu0 %vm518_vm0, %v517_v0  ;;  %v401_v40 = vld [vmem:[%s699_s8] ss:$0 sm:$0xff] }
  0x18   :  { %447 = vmatprep.subr.mxu0 %v517_v0  ;;  %468 = vmatprep.subr.mxu1 %v517_v0 }
  0x19   :  { %448 = vmatpush3.msra.mxu0 %v212_v8  ;;  %469 = vmatpush3.msra.mxu1 %v305_v17 }
  0x1a   :  { %449 = vmatprep.subr.mxu0 %v517_v0  ;;  %470 = vmatprep.subr.mxu1 %v517_v0 }
  0x1b   :  { %450 = vmatpush3.msra.mxu0 %v211_v9  ;;  %471 = vmatpush3.msra.mxu1 %v304_v18 }
  0x1c   :  { %451 = vmatprep.subr.mxu0 %v517_v0  ;;  %472 = vmatprep.subr.mxu1 %v517_v0 }
  0x1d   :  { %452 = vmatpush3.msra.mxu0 %v210_v10  ;;  %473 = vmatpush3.msra.mxu1 %v303_v19 }
  0x1e   :  { %453 = vmatprep.subr.mxu0 %v517_v0  ;;  %474 = vmatprep.subr.mxu1 %v517_v0 }
  0x1f   :  { %454 = vmatpush3.msra.mxu0 %v209_v11  ;;  %475 = vmatpush3.msra.mxu1 %v302_v20 }
  0x20   :  { %455 = vmatprep.subr.mxu0 %v517_v0  ;;  %476 = vmatprep.subr.mxu1 %v517_v0 }
  0x21   :  { %456 = vmatpush3.msra.mxu0 %v208_v12  ;;  %477 = vmatpush3.msra.mxu1 %v301_v21 }
  0x22   :  { %457 = vmatprep.subr.mxu0 %v517_v0  ;;  %478 = vmatprep.subr.mxu1 %v517_v0 }
  0x23   :  { %458 = vmatpush3.msra.mxu0 %v207_v13  ;;  %479 = vmatpush3.msra.mxu1 %v300_v22 }
  0x24   :  { %459 = vmatprep.subr.mxu0 %v517_v0  ;;  %480 = vmatprep.subr.mxu1 %v517_v0 }
  0x25   :  { %460 = vmatpush3.msra.mxu0 %v206_v14  ;;  %481 = vmatpush3.msra.mxu1 %v299_v23 }
  0x26   :  { %482 = vmatprep.subr.mxu1 %v517_v0 }
  0x27   :  { %483 = vmatpush3.msra.mxu1 %v298_v32 }
  0x28   :  { %484 = vmatprep.subr.mxu1 %v517_v0 }
  0x29   :  { %485 = vmatpush3.msra.mxu1 %v297_v33 }
  0x2a   :  { %486 = vmatprep.subr.mxu1 %v517_v0 }
  0x2b   :  { %487 = vmatpush3.msra.mxu1 %v296_v34 }
  0xd2   :  { %v120_v24 = vpop.f32.mrf.mxu0 }
  0xd4   :  { %v437_v25 = vpop.f32.mrf.mxu0 }
  0xd6   :  { %v193_v26 = vpop.f32.mrf.mxu0 }
  0xd7   :  { %v194_v28 = vadd.f32 %v193_v26, %v120_v24 }
  0xd8   :  { %v444_v29 = vpop.f32.mrf.mxu0 }
  0xd9   :  { %v204_v30 = vadd.f32 %v398_v27, %v194_v28 }
  0xdb   :  { %v205_v31 = vmax.f32 %v204_v30, 0.0 }
  0xdd   :  { %462 = vmatmul.mubr.msk.f32.vlgmr.msra.gmra.mxu0 %vm221_vm2, %v205_v31 }
 0x19d   :  { %v291_v36 = vpop.f32.mrf.mxu0 }
 0x19e   :  { %v292_v37 = vadd.f32 %v399_v35, %v291_v36 }
 0x19f   :  { %v463_v38 = vpop.f32.mrf.mxu0 }
 0x1a0   :  { %v295_v39 = vmax.f32 %v292_v37, 0.0 }
 0x1a2   :  { %489 = vmatmul.mubr.msk.f32.vlgmr.msra.gmra.mxu1 %vm315_vm3, %v295_v39 }
 0x262   :  { %v385_v41 = vpop.f32.mrf.mxu1 }
 0x263   :  { %v386_v42 = vadd.f32 %v401_v40, %v385_v41 }
 0x264   :  { %v490_v43 = vpop.f32.mrf.mxu1 }
 0x265   :  { %390 = vst.msk [vmem:[%s700_s9] sm:$0xff] %vm389_vm4, %v386_v42 }
 0x266   :  { %395 = vsyncpa [#allocation3], 1 }

</bundles_post_ra>
